<compile_context>
chip_gen: v7x
topology: tpu7x:2x2x1
jax: 0.10.0
libtpu: 0.0.40
codegen_flags: <defaults>
</compile_context>

<pallas_src>
import math

import jax
import jax.numpy as jnp
from jax.experimental import pallas as pl
from jax.experimental.pallas import tpu as pltpu

NEG_SLOPE = 0.2   # LeakyReLU(0.2)
HPAD = 128        # lane-padded width used for hidden features


def _round_up(n, m):
    return ((n + m - 1) // m) * m


def _default_epilogue_dtype():
    """bf16 epilogue only on chips with a bf16 VALU (v6e / v7x); f32 otherwise."""
    try:
        kind = jax.devices()[0].device_kind.lower()
    except Exception:  # pragma: no cover - defensive
        return jnp.float32
    if ("v6" in kind) or ("v7" in kind):
        return jnp.bfloat16
    return jnp.float32


def _leaky_relu(x):
    # identical to LeakyReLU(0.2) for slope < 1; 2 VALU ops instead of 3
    return jnp.maximum(x, NEG_SLOPE * x)


def critic_ranknet_kernel(x_ref, sel_ref, w1_ref, w23_ref, b123_ref,
                          w4_ref, b4_ref, o_ref):
    """One batch tile: mask -> 4 fused (matmul + bias + LeakyReLU) layers.

    x_ref, sel_ref : (TB, in_f)        bf16
    w1_ref         : (in_f, HPAD)      bf16, cols [hid:] zero-padded
    w23_ref        : (2, HPAD, HPAD)   bf16, W2/W3 zero-padded
    b123_ref       : (3, HPAD)         epilogue dtype (bf16 on v6e/v7x, else f32)
    w4_ref         : (HPAD, out)       bf16, rows [hid:] zero-padded
    b4_ref         : (1, out)          f32
    o_ref          : (TB, out)         f32   (slim, no lane padding)
    """
    ep_dtype = b123_ref.dtype
    mm_dtype = w1_ref.dtype

    b123 = b123_ref[...]                                   # (3, HPAD), loaded once

    # elementwise mask (exact for {0,1} selection); operands already bf16
    h = (x_ref[...] * sel_ref[...]).astype(mm_dtype)

    # layer 1
    a = jnp.dot(h, w1_ref[...], preferred_element_type=jnp.float32)
    a = a.astype(ep_dtype) + b123[0:1, :]
    h = _leaky_relu(a).astype(mm_dtype)
    # layer 2  (zero-padded cols of h meet zero-padded rows of W2 -> exact)
    a = jnp.dot(h, w23_ref[0], preferred_element_type=jnp.float32)
    a = a.astype(ep_dtype) + b123[1:2, :]
    h = _leaky_relu(a).astype(mm_dtype)
    # layer 3
    a = jnp.dot(h, w23_ref[1], preferred_element_type=jnp.float32)
    a = a.astype(ep_dtype) + b123[2:3, :]
    h = _leaky_relu(a).astype(mm_dtype)
    # layer 4: no activation; final bias-add kept in f32, slim store
    out = jnp.dot(h, w4_ref[...], preferred_element_type=jnp.float32) + b4_ref[...]
    o_ref[...] = out.astype(o_ref.dtype)


def pack_params(params, matmul_dtype, epilogue_dtype):
    """Pack weights/biases into layout-aligned, zero-padded arrays."""
    in_f, hid = params["w1"].shape
    out_features = params["w4"].shape[1]
    assert hid <= HPAD and out_features <= HPAD, "hidden/output > 128 unsupported"
    # TODO(synk): generalize for hidden_size > 128 (tile the K/N dims of the pack).

    def pad_cols(w):
        return jnp.zeros((w.shape[0], HPAD), jnp.float32).at[:, : w.shape[1]].set(w)

    def pad_rows_cols(w):
        return jnp.zeros((HPAD, HPAD), jnp.float32).at[: w.shape[0], : w.shape[1]].set(w)

    w1 = pad_cols(params["w1"]).astype(matmul_dtype)                       # (in_f, HPAD)
    w23 = jnp.stack([pad_rows_cols(params["w2"]),
                     pad_rows_cols(params["w3"])]).astype(matmul_dtype)    # (2, HPAD, HPAD)
    w4 = (jnp.zeros((HPAD, out_features), jnp.float32)
          .at[:hid, :].set(params["w4"]).astype(matmul_dtype))             # (HPAD, out)

    b123 = jnp.zeros((3, HPAD), jnp.float32)
    b123 = b123.at[0, :hid].set(params["b1"][0])
    b123 = b123.at[1, :hid].set(params["b2"][0])
    b123 = b123.at[2, :hid].set(params["b3"][0])
    b123 = b123.astype(epilogue_dtype)                                     # (3, HPAD)
    b4 = params["b4"].astype(jnp.float32)                                  # (1, out)
    return w1, w23, b123, w4, b4


def critic_ranknet_forward(x, sel, params, *, block_batch=4096,
                           matmul_dtype=jnp.bfloat16, epilogue_dtype=None):
    """x, sel: (batch, inputs). params: w1..w4 as (in,out), b1..b4 as (1,out)."""
    batch, in_f = x.shape
    hid = params["w1"].shape[1]
    out_features = params["w4"].shape[1]

    if epilogue_dtype is None:
        epilogue_dtype = _default_epilogue_dtype()

    w1, w23, b123, w4, b4 = pack_params(params, matmul_dtype, epilogue_dtype)

    # bf16 inputs halve the dominant input DMA traffic; callers that already
    # hold bf16 activations should pass them directly (this cast is a no-op then).
    x = x.astype(matmul_dtype)
    sel = sel.astype(matmul_dtype)

    # Pad only to the sublane multiple (<= 7 extra rows). The ragged last grid
    # block (when batch_p % tb != 0) is handled by Pallas: OOB reads feed only
    # rows whose stores are masked, and the computation is row-independent.
    batch_p = _round_up(batch, 8)
    if batch_p != batch:
        pad = batch_p - batch
        x = jnp.pad(x, ((0, pad), (0, 0)))
        sel = jnp.pad(sel, ((0, pad), (0, 0)))

    # Batch tile: big enough to amortize the ~0.35us/step grid overhead, capped
    # so large batches keep >=4 grid steps (megacore split on v7x).
    block_batch = max(_round_up(block_batch, 16), 16)
    tb = min(block_batch, _round_up(pl.cdiv(batch_p, 4), 16), batch_p)
    tb = max(tb, 8)
    grid = (pl.cdiv(batch_p, tb),)

    flops = 2 * batch_p * (in_f * hid + 2 * hid * hid + hid * out_features)
    bytes_accessed = (
        x.size * x.dtype.itemsize + sel.size * sel.dtype.itemsize
        + batch_p * out_features * 4
        + w1.size * w1.dtype.itemsize + w23.size * w23.dtype.itemsize
        + b123.size * b123.dtype.itemsize
        + w4.size * w4.dtype.itemsize + b4.size * b4.dtype.itemsize)
    cost = pl.CostEstimate(flops=int(flops), transcendentals=0,
                           bytes_accessed=int(bytes_accessed))

    out = pl.pallas_call(
        critic_ranknet_kernel,
        out_shape=jax.ShapeDtypeStruct((batch_p, out_features), jnp.float32),
        grid_spec=pltpu.PrefetchScalarGridSpec(
            num_scalar_prefetch=0,
            grid=grid,
            in_specs=[
                pl.BlockSpec((tb, in_f), lambda i: (i, 0)),      # x tile (bf16)
                pl.BlockSpec((tb, in_f), lambda i: (i, 0)),      # sel tile (bf16)
                pl.BlockSpec(w1.shape, lambda i: (0, 0)),        # W1  (VMEM-resident)
                pl.BlockSpec(w23.shape, lambda i: (0, 0, 0)),    # W2/W3 pack
                pl.BlockSpec(b123.shape, lambda i: (0, 0)),      # b1..b3
                pl.BlockSpec(w4.shape, lambda i: (0, 0)),        # W4 (slim N)
                pl.BlockSpec(b4.shape, lambda i: (0, 0)),        # b4
            ],
            out_specs=pl.BlockSpec((tb, out_features), lambda i: (i, 0)),
        ),
        compiler_params=pltpu.CompilerParams(
            dimension_semantics=("parallel",),      # megacore split on v7x
            vmem_limit_bytes=32 * 1024 * 1024,      # safe ceiling on v5e/v6e/v7x
        ),
        cost_estimate=cost,
    )(x, sel, w1, w23, b123, w4, b4)

    return out if batch_p == batch else out[:batch]


def init_params(key, inputs, hidden_size, outputs):
    """Deterministic init mimicking nn.Linear (uniform +/- 1/sqrt(fan_in))."""
    dims = [(inputs, hidden_size), (hidden_size, hidden_size),
            (hidden_size, hidden_size), (hidden_size, outputs)]
    params = {}
    for i, (fan_in, fan_out) in enumerate(dims, start=1):
        key, kw, kb = jax.random.split(key, 3)
        bound = 1.0 / math.sqrt(fan_in)
        params[f"w{i}"] = jax.random.uniform(
            kw, (fan_in, fan_out), jnp.float32, -bound, bound)
        params[f"b{i}"] = jax.random.uniform(
            kb, (1, fan_out), jnp.float32, -bound, bound)
    return params


def reference_forward(x, sel, params, *, matmul_dtype=jnp.float32,
                      epilogue_dtype=jnp.float32):
    """Pure-JAX reference that mirrors the kernel's dtype/arithmetic choices."""
    def layer(h, w, b, act):
        a = jnp.dot(h.astype(matmul_dtype), w.astype(matmul_dtype),
                    preferred_element_type=jnp.float32)
        if act:
            a = a.astype(epilogue_dtype) + b.astype(epilogue_dtype)
            return jnp.maximum(a, NEG_SLOPE * a)
        return a + b.astype(jnp.float32)

    h = x.astype(matmul_dtype) * sel.astype(matmul_dtype)
    h = layer(h, params["w1"], params["b1"], True)
    h = layer(h, params["w2"], params["b2"], True)
    h = layer(h, params["w3"], params["b3"], True)
    return layer(h, params["w4"], params["b4"], False).astype(jnp.float32)


if __name__ == "__main__":
    batch, inputs, hidden_size, outputs = 8, 16, 32, 4

    key = jax.random.PRNGKey(0)
    key, kx, ks = jax.random.split(key, 3)
    x = jax.random.normal(kx, (batch, inputs), jnp.float32)
    # selection mask in {0, 1} (as produced by the INVASE actor)
    sel = (jax.random.uniform(ks, (batch, inputs), jnp.float32) > 0.5).astype(jnp.float32)

    params = init_params(key, inputs, hidden_size, outputs)

    ep_dtype = _default_epilogue_dtype()
    out = critic_ranknet_forward(x, sel, params)
    jax.block_until_ready(out)
    assert out.shape == (batch, outputs)

    # check against a reference matched to the kernel's dtype choices ...
    ref_match = reference_forward(x, sel, params,
                                  matmul_dtype=jnp.bfloat16, epilogue_dtype=ep_dtype)
    assert jnp.allclose(out, ref_match, atol=2e-2, rtol=2e-2), "mismatch vs matched reference"
    # ... and stay reasonably close to the exact f32 (PyTorch-equivalent) reference
    ref_f32 = reference_forward(x, sel, params)
    assert jnp.allclose(out, ref_f32, atol=1e-1, rtol=1e-1), "mismatch vs f32 reference"

    print("KERNEL_OK")
</pallas_src>

<mosaic_0001>
module attributes {stable_mosaic.version = 11 : i64} {
  func.func @critic_ranknet_kernel(%arg0: i32, %arg1: memref<8x16xbf16, #tpu.memory_space<vmem>>, %arg2: memref<8x16xbf16, #tpu.memory_space<vmem>>, %arg3: memref<16x128xbf16, #tpu.memory_space<vmem>>, %arg4: memref<2x128x128xbf16, #tpu.memory_space<vmem>>, %arg5: memref<3x128xf32, #tpu.memory_space<vmem>>, %arg6: memref<128x4xbf16, #tpu.memory_space<vmem>>, %arg7: memref<1x4xf32, #tpu.memory_space<vmem>>, %arg8: memref<8x4xf32, #tpu.memory_space<vmem>>) attributes {dimension_semantics = [#tpu.dimension_semantics<parallel>], iteration_bounds = array<i64: 1>, scalar_prefetch = 0 : i64, scratch_operands = 0 : i64, tpu.core_type = #tpu.core_type<tc>, window_params = [{transform_indices = @transform_0, window_bounds = array<i64: 8, 16>}, {transform_indices = @transform_1, window_bounds = array<i64: 8, 16>}, {pipeline_mode = #tpu.pipeline_mode<synchronous>, transform_indices = @transform_2, window_bounds = array<i64: 16, 128>}, {pipeline_mode = #tpu.pipeline_mode<synchronous>, transform_indices = @transform_3, window_bounds = array<i64: 2, 128, 128>}, {pipeline_mode = #tpu.pipeline_mode<synchronous>, transform_indices = @transform_4, window_bounds = array<i64: 3, 128>}, {pipeline_mode = #tpu.pipeline_mode<synchronous>, transform_indices = @transform_5, window_bounds = array<i64: 128, 4>}, {pipeline_mode = #tpu.pipeline_mode<synchronous>, transform_indices = @transform_6, window_bounds = array<i64: 1, 4>}, {transform_indices = @transform_7, window_bounds = array<i64: 8, 4>}]} {
    %c0 = arith.constant 0 : index
    %c0_0 = arith.constant 0 : index
    %0 = vector.load %arg5[%c0, %c0_0] : memref<3x128xf32, #tpu.memory_space<vmem>>, vector<3x128xf32>
    %c0_1 = arith.constant 0 : index
    %c0_2 = arith.constant 0 : index
    %1 = vector.load %arg1[%c0_1, %c0_2] : memref<8x16xbf16, #tpu.memory_space<vmem>>, vector<8x16xbf16>
    %c0_3 = arith.constant 0 : index
    %c0_4 = arith.constant 0 : index
    %2 = vector.load %arg2[%c0_3, %c0_4] : memref<8x16xbf16, #tpu.memory_space<vmem>>, vector<8x16xbf16>
    %3 = arith.mulf %1, %2 : vector<8x16xbf16>
    %c0_5 = arith.constant 0 : index
    %c0_6 = arith.constant 0 : index
    %4 = vector.load %arg3[%c0_5, %c0_6] : memref<16x128xbf16, #tpu.memory_space<vmem>>, vector<16x128xbf16>
    %cst = arith.constant dense<0.000000e+00> : vector<8x128xf32>
    %5 = tpu.matmul %3, %4, %cst {dimension_numbers = #tpu.dot_dimension_numbers<[1], [0], [0], [1], [0, 0, 1, 1], [], []>} : vector<8x16xbf16>, vector<16x128xbf16>, vector<8x128xf32> -> vector<8x128xf32>
    %6 = vector.extract_strided_slice %0 {offsets = [0, 0], sizes = [1, 128], strides = [1, 1]} : vector<3x128xf32> to vector<1x128xf32>
    %7 = vector.broadcast %6 : vector<1x128xf32> to vector<8x128xf32>
    %8 = arith.addf %5, %7 : vector<8x128xf32>
    %cst_7 = arith.constant 2.000000e-01 : f32
    %9 = vector.broadcast %cst_7 : f32 to vector<8x128xf32>
    %10 = arith.mulf %9, %8 : vector<8x128xf32>
    %11 = arith.maximumf %8, %10 : vector<8x128xf32>
    %12 = arith.truncf %11 : vector<8x128xf32> to vector<8x128xbf16>
    %c0_8 = arith.constant 0 : index
    %c0_9 = arith.constant 0 : index
    %c0_10 = arith.constant 0 : index
    %13 = vector.load %arg4[%c0_8, %c0_9, %c0_10] : memref<2x128x128xbf16, #tpu.memory_space<vmem>>, vector<1x128x128xbf16>
    %14 = vector.shape_cast %13 : vector<1x128x128xbf16> to vector<128x128xbf16>
    %cst_11 = arith.constant dense<0.000000e+00> : vector<8x128xf32>
    %15 = tpu.matmul %12, %14, %cst_11 {dimension_numbers = #tpu.dot_dimension_numbers<[1], [0], [0], [1], [0, 0, 1, 1], [], []>} : vector<8x128xbf16>, vector<128x128xbf16>, vector<8x128xf32> -> vector<8x128xf32>
    %16 = vector.extract_strided_slice %0 {offsets = [1, 0], sizes = [1, 128], strides = [1, 1]} : vector<3x128xf32> to vector<1x128xf32>
    %17 = vector.broadcast %16 : vector<1x128xf32> to vector<8x128xf32>
    %18 = arith.addf %15, %17 : vector<8x128xf32>
    %cst_12 = arith.constant 2.000000e-01 : f32
    %19 = vector.broadcast %cst_12 : f32 to vector<8x128xf32>
    %20 = arith.mulf %19, %18 : vector<8x128xf32>
    %21 = arith.maximumf %18, %20 : vector<8x128xf32>
    %22 = arith.truncf %21 : vector<8x128xf32> to vector<8x128xbf16>
    %c1 = arith.constant 1 : index
    %c0_13 = arith.constant 0 : index
    %c0_14 = arith.constant 0 : index
    %23 = vector.load %arg4[%c1, %c0_13, %c0_14] : memref<2x128x128xbf16, #tpu.memory_space<vmem>>, vector<1x128x128xbf16>
    %24 = vector.shape_cast %23 : vector<1x128x128xbf16> to vector<128x128xbf16>
    %cst_15 = arith.constant dense<0.000000e+00> : vector<8x128xf32>
    %25 = tpu.matmul %22, %24, %cst_15 {dimension_numbers = #tpu.dot_dimension_numbers<[1], [0], [0], [1], [0, 0, 1, 1], [], []>} : vector<8x128xbf16>, vector<128x128xbf16>, vector<8x128xf32> -> vector<8x128xf32>
    %26 = vector.extract_strided_slice %0 {offsets = [2, 0], sizes = [1, 128], strides = [1, 1]} : vector<3x128xf32> to vector<1x128xf32>
    %27 = vector.broadcast %26 : vector<1x128xf32> to vector<8x128xf32>
    %28 = arith.addf %25, %27 : vector<8x128xf32>
    %cst_16 = arith.constant 2.000000e-01 : f32
    %29 = vector.broadcast %cst_16 : f32 to vector<8x128xf32>
    %30 = arith.mulf %29, %28 : vector<8x128xf32>
    %31 = arith.maximumf %28, %30 : vector<8x128xf32>
    %32 = arith.truncf %31 : vector<8x128xf32> to vector<8x128xbf16>
    %c0_17 = arith.constant 0 : index
    %c0_18 = arith.constant 0 : index
    %33 = vector.load %arg6[%c0_17, %c0_18] : memref<128x4xbf16, #tpu.memory_space<vmem>>, vector<128x4xbf16>
    %cst_19 = arith.constant dense<0.000000e+00> : vector<8x4xf32>
    %34 = tpu.matmul %32, %33, %cst_19 {dimension_numbers = #tpu.dot_dimension_numbers<[1], [0], [0], [1], [0, 0, 1, 1], [], []>} : vector<8x128xbf16>, vector<128x4xbf16>, vector<8x4xf32> -> vector<8x4xf32>
    %c0_20 = arith.constant 0 : index
    %c0_21 = arith.constant 0 : index
    %35 = vector.load %arg7[%c0_20, %c0_21] : memref<1x4xf32, #tpu.memory_space<vmem>>, vector<1x4xf32>
    %36 = vector.broadcast %35 : vector<1x4xf32> to vector<8x4xf32>
    %37 = arith.addf %34, %36 : vector<8x4xf32>
    %c0_22 = arith.constant 0 : index
    %c0_23 = arith.constant 0 : index
    %38 = vector.load %arg8[%c0_22, %c0_23] : memref<8x4xf32, #tpu.memory_space<vmem>>, vector<8x4xf32>
    tpu.vector_store %arg8[%c0_22, %c0_23], %37 {strides = array<i32>} : memref<8x4xf32, #tpu.memory_space<vmem>>, vector<8x4xf32>,
    return
  }
  func.func @transform_0(%arg0: i32) -> (i32, i32) {
    %c0_i32 = arith.constant 0 : i32
    %c0_i32_0 = arith.constant 0 : i32
    return %arg0, %c0_i32 : i32, i32
  }
  func.func @transform_1(%arg0: i32) -> (i32, i32) {
    %c0_i32 = arith.constant 0 : i32
    %c0_i32_0 = arith.constant 0 : i32
    return %arg0, %c0_i32 : i32, i32
  }
  func.func @transform_2(%arg0: i32) -> (i32, i32) {
    %c0_i32 = arith.constant 0 : i32
    %c0_i32_0 = arith.constant 0 : i32
    %c0_i32_1 = arith.constant 0 : i32
    return %c0_i32, %c0_i32_0 : i32, i32
  }
  func.func @transform_3(%arg0: i32) -> (i32, i32, i32) {
    %c0_i32 = arith.constant 0 : i32
    %c0_i32_0 = arith.constant 0 : i32
    %c0_i32_1 = arith.constant 0 : i32
    %c0_i32_2 = arith.constant 0 : i32
    return %c0_i32, %c0_i32_0, %c0_i32_1 : i32, i32, i32
  }
  func.func @transform_4(%arg0: i32) -> (i32, i32) {
    %c0_i32 = arith.constant 0 : i32
    %c0_i32_0 = arith.constant 0 : i32
    %c0_i32_1 = arith.constant 0 : i32
    return %c0_i32, %c0_i32_0 : i32, i32
  }
  func.func @transform_5(%arg0: i32) -> (i32, i32) {
    %c0_i32 = arith.constant 0 : i32
    %c0_i32_0 = arith.constant 0 : i32
    %c0_i32_1 = arith.constant 0 : i32
    return %c0_i32, %c0_i32_0 : i32, i32
  }
  func.func @transform_6(%arg0: i32) -> (i32, i32) {
    %c0_i32 = arith.constant 0 : i32
    %c0_i32_0 = arith.constant 0 : i32
    %c0_i32_1 = arith.constant 0 : i32
    return %c0_i32, %c0_i32_0 : i32, i32
  }
  func.func @transform_7(%arg0: i32) -> (i32, i32) {
    %c0_i32 = arith.constant 0 : i32
    %c0_i32_0 = arith.constant 0 : i32
    return %arg0, %c0_i32 : i32, i32
  }
}

</mosaic_0001>

<bundles_post_ra>
// kernel: tpu_custom_call.1
= control target key start
LH: loop header
LB: loop body
LE: loop exit
PB: predicated region body
PF: predicated region fallthrough
CT: control target
= control target key end

     0   :  { %12 = vsyncpa [#allocation3], 0  ;;  %s621_s24 = smov [#allocation2]   ;;  %s753_s0 = inlined_call_operand.vmem [shape: bf16[8,16], index: 0, kind: input, shape index: {}]   ;;  %s754_s1 = inlined_call_operand.vmem [shape: bf16[8,16], index: 1, kind: input, shape index: {}]   ;;  %s755_s2 = inlined_call_operand.vmem [shape: bf16[16,128], index: 2, kind: input, shape index: {}]   ;;  %s756_s3 = inlined_call_operand.hbm [shape: bf16[2,128,128], index: 3, kind: input, shape index: {}]   ;;  %s757_s4 = inlined_call_operand.vmem [shape: f32[3,128], index: 4, kind: input, shape index: {}]   ;;  %s758_s5 = inlined_call_operand.vmem [shape: bf16[128,4], index: 5, kind: input, shape index: {}]   ;;  %s759_s6 = inlined_call_operand.vmem [shape: f32[1,4], index: 6, kind: input, shape index: {}]   ;;  %s760_s7 = inlined_call_operand.vmem [shape: f32[8,4], index: 7, kind: output, shape index: {}]  }
   0x1   :  { %s24_s25 = sshll.u32 %s621_s24, 4  ;;  %s597_s28 = scalar_lea.hbm %s756_s3, 2048  ;;  %s25_s25 = int_to_ptr.vmem [resolvable:$true] %s24_s25 }
   0x2   :  { %p598_p0 = scmp.ne.s32.totalorder %s756_s3, %s597_s28  ;;  %p601_p1 = scmp.lt.u32.totalorder %s597_s28, %s756_s3 }
   0x4   :  { %p603_p2 = pnand %p601_p1, %p598_p0 }
   0x6   :  { %606 = shalt.err (!%p603_p2)
}
   0x7   :  { %s607_s10 = scalar_lea.vmem %s25_s25, 2048  ;;  %p612_p4 = scmp.lt.s32.totalorder %s25_s25, %s25_s25 }
   0x8   :  { %p608_p3 = scmp.ne.s32.totalorder %s25_s25, %s607_s10  ;;  %p613_p5 = scmp.lt.s32.totalorder %s607_s10, %s607_s10 }
   0xa   :  { %p614_p6 = por %p613_p5, %p612_p4 }
   0xc   :  { %p615_p7 = pnand %p614_p6, %p608_p3 }
   0xe   :  { %618 = shalt.err (!%p615_p7)
}
   0xf   :  { %s622_s11 = smov 64   ;;  %s623_s12 = smov 4  }
  0x10   :  { %30 = dma.hbm_to_vmem [thread:$0]  %s756_s3, 2048, %s25_s25, [#allocation3], %s622_s11, %s622_s11, %s623_s12  }
  0x11   :  { %619 = dma.done.wait [#allocation3], 2048  }
  0x12   :  { %620 = vsyncadd [#allocation3], 4294965248  ;;  %v624_v0 = vmov 0.0   ;;  %vm625_vm0 = vmmov 0   ;;  %v572_v1 = vld [vmem:[%s755_s2] sm:$0xff]   ;;  %vm57_vm1 = vcmask 130048   ;;  %v47_v19 = vlaneseq }
  0x13   :  { %501 = vmatprep.subr.bf16.mxu0 %v624_v0  ;;  %503 = vmatprep.mubr.msk.bf16.mxu0 %vm625_vm0, %v624_v0  ;;  %v42_v2 = vld [vmem:[%s753_s0] sm:$0xf]  ;;  %v574_v6 = vld [vmem:[#allocation2 + $0x8] sm:$0xff]   ;;  %v575_v7 = vld [vmem:[#allocation2 + $0x10] sm:$0xff]   ;;  %vm438_vm2 = vcmask 31744  }
  0x14   :  { %507 = vmatprep.subr.bf16.mxu1 %v624_v0  ;;  %523 = vmatprep.mubr.msk.bf16.mxu1 %vm625_vm0, %v624_v0  ;;  %v43_v3 = vld [vmem:[%s754_s1] sm:$0xf]  ;;  %v576_v8 = vld [vmem:[#allocation2 + $0x18] sm:$0xff]   ;;  %v578_v10 = vld [vmem:[#allocation2 + $0x28] sm:$0xff]   ;;  %v48_v20 = vshrl.u32 %v47_v19, 7 }
  0x15   :  { %502 = vmatpush3.bf16.msra.mxu0 %v572_v1  ;;  %v44_v4 = vmul.bf16 %v43_v3, %v42_v2  ;;  %v573_v5 = vld [vmem:[#allocation2] sm:$0xff]   ;;  %v579_v11 = vld [vmem:[#allocation2 + $0x30] sm:$0xff]   ;;  %v580_v12 = vld [vmem:[#allocation2 + $0x38] sm:$0xff]  }
  0x16   :  { %527 = vmatprep.subr.bf16.mxu0 %v624_v0  ;;  %508 = vmatpush3.bf16.msra.mxu1 %v573_v5  ;;  %v577_v9 = vld [vmem:[#allocation2 + $0x20] sm:$0xff]   ;;  %v582_v14 = vld [vmem:[#allocation2 + $0x48] sm:$0xff]   ;;  %v583_v15 = vld [vmem:[#allocation2 + $0x50] sm:$0xff]   ;;  %v49_v21 = vsub.s32 0, %v48_v20  ;;  %v122_v40 = vsub.s32 1, %v48_v20  ;;  %v234_v52 = vsub.s32 2, %v48_v20 }
  0x17   :  { %509 = vmatprep.subr.bf16.mxu1 %v624_v0  ;;  %v581_v13 = vld [vmem:[#allocation2 + $0x40] sm:$0xff]   ;;  %v584_v16 = vld [vmem:[#allocation2 + $0x58] sm:$0xff]   ;;  %v586_v18 = vld [vmem:[#allocation2 + $0x68] sm:$0xff]  }
  0x18   :  { %504 = vmatmul.mubr.msk.bf16.vlgmr.msra.gmra.mrb[0].mxu0 %vm57_vm1, %v44_v4  ;;  %v585_v17 = vld [vmem:[#allocation2 + $0x60] sm:$0xff]   ;;  %v587_v32 = vld [vmem:[#allocation2 + $0x70] sm:$0xff]   ;;  %v588_v33 = vld [vmem:[#allocation2 + $0x78] sm:$0xff]  }
  0x19   :  { %543 = vmatprep.mubr.msk.bf16.mxu0 %vm625_vm0, %v624_v0  ;;  %528 = vmatpush3.bf16.msra.mxu0 %v581_v13  ;;  %v41_v22 = vld [vmem:[%s757_s4] sm:$0x7]  ;;  %v590_v35 = vld [vmem:[%s758_s5 + $0x8] sm:$0xff]   ;;  %v591_v36 = vld [vmem:[%s758_s5 + $0x10] sm:$0xff]  }
  0x1a   :  { %510 = vmatpush3.bf16.msra.mxu1 %v574_v6  ;;  %529 = vmatprep.subr.bf16.mxu0 %v624_v0  ;;  %v50_v23 = vrot.slane %v41_v22, %v49_v21  ;;  %v589_v34 = vld [vmem:[%s758_s5] sm:$0xff]   ;;  %v592_v37 = vld [vmem:[%s758_s5 + $0x18] sm:$0xff]   ;;  %v594_v39 = vld [vmem:[%s758_s5 + $0x28] sm:$0xff]   ;;  %v123_v41 = vrot.slane %v41_v22, %v122_v40  ;;  %v235_v53 = vrot.slane %v41_v22, %v234_v52 }
  0x1b   :  { %511 = vmatprep.subr.bf16.mxu1 %v624_v0  ;;  %v593_v38 = vld [vmem:[%s758_s5 + $0x20] sm:$0xff]   ;;  %v595_v50 = vld [vmem:[%s758_s5 + $0x30] sm:$0xff]   ;;  %v596_v51 = vld [vmem:[%s758_s5 + $0x38] sm:$0xff]  }
  0x1c   :  { %v463_v62 = vld [vmem:[%s759_s6] ss:$0 sm:$0xff] }
  0x1d   :  { %530 = vmatpush3.bf16.msra.mxu0 %v582_v14 }
  0x1e   :  { %512 = vmatpush3.bf16.msra.mxu1 %v575_v7  ;;  %531 = vmatprep.subr.bf16.mxu0 %v624_v0 }
  0x1f   :  { %513 = vmatprep.subr.bf16.mxu1 %v624_v0 }
  0x21   :  { %532 = vmatpush3.bf16.msra.mxu0 %v583_v15 }
  0x22   :  { %514 = vmatpush3.bf16.msra.mxu1 %v576_v8  ;;  %533 = vmatprep.subr.bf16.mxu0 %v624_v0 }
  0x23   :  { %515 = vmatprep.subr.bf16.mxu1 %v624_v0 }
  0x25   :  { %534 = vmatpush3.bf16.msra.mxu0 %v584_v16 }
  0x26   :  { %516 = vmatpush3.bf16.msra.mxu1 %v577_v9  ;;  %535 = vmatprep.subr.bf16.mxu0 %v624_v0 }
  0x27   :  { %517 = vmatprep.subr.bf16.mxu1 %v624_v0 }
  0x29   :  { %536 = vmatpush3.bf16.msra.mxu0 %v585_v17 }
  0x2a   :  { %518 = vmatpush3.bf16.msra.mxu1 %v578_v10  ;;  %537 = vmatprep.subr.bf16.mxu0 %v624_v0 }
  0x2b   :  { %519 = vmatprep.subr.bf16.mxu1 %v624_v0 }
  0x2d   :  { %538 = vmatpush3.bf16.msra.mxu0 %v586_v18 }
  0x2e   :  { %520 = vmatpush3.bf16.msra.mxu1 %v579_v11  ;;  %539 = vmatprep.subr.bf16.mxu0 %v624_v0 }
  0x2f   :  { %521 = vmatprep.subr.bf16.mxu1 %v624_v0 }
  0x31   :  { %540 = vmatpush3.bf16.msra.mxu0 %v587_v32 }
  0x32   :  { %522 = vmatpush3.bf16.msra.mxu1 %v580_v12  ;;  %541 = vmatprep.subr.bf16.mxu0 %v624_v0 }
  0x33   :  { %547 = vmatprep.subr.bf16.mxu1 %v624_v0 }
  0x35   :  { %542 = vmatpush3.bf16.msra.mxu0 %v588_v33 }
  0xeb   :  { %v95_v24 = vpop.f32.mrb[0].mxu0 }
  0xec   :  { %v96_v25 = vadd.f32 %v95_v24, %v50_v23  ;;  %v505_v26 = vpop.f32.mrb[1].mxu0 }
  0xed   :  { %v98_v27 = vpop.f32.mrb[2].mxu0 }
  0xee   :  { %v101_v28 = vmul.f32 0.2, %v96_v25  ;;  %v506_v29 = vpop.f32.mrb[3].mxu0 }
  0xf0   :  { %v102_v30 = vmax.f32 %v96_v25, %v101_v28 }
  0xf2   :  { %v103_v31 = vpack.c.bf16 %v102_v30, %v102_v30 }
  0xf4   :  { %524 = vmatmul.mubr.bf16.vlgmr.msra.gmra.mrb[0].mxu1 %v103_v31 }
  0xf5   :  { %563 = vmatprep.mubr.msk.bf16.mxu1 %vm625_vm0, %v624_v0  ;;  %548 = vmatpush3.bf16.msra.mxu1 %v589_v34 }
  0xf6   :  { %549 = vmatprep.subr.bf16.mxu1 %v624_v0 }
  0xf9   :  { %550 = vmatpush3.bf16.msra.mxu1 %v590_v35 }
  0xfa   :  { %551 = vmatprep.subr.bf16.mxu1 %v624_v0 }
  0xfd   :  { %552 = vmatpush3.bf16.msra.mxu1 %v591_v36 }
  0xfe   :  { %553 = vmatprep.subr.bf16.mxu1 %v624_v0 }
 0x101   :  { %554 = vmatpush3.bf16.msra.mxu1 %v592_v37 }
 0x102   :  { %555 = vmatprep.subr.bf16.mxu1 %v624_v0 }
 0x105   :  { %556 = vmatpush3.bf16.msra.mxu1 %v593_v38 }
 0x106   :  { %557 = vmatprep.subr.bf16.mxu1 %v624_v0 }
 0x109   :  { %558 = vmatpush3.bf16.msra.mxu1 %v594_v39 }
 0x10a   :  { %559 = vmatprep.subr.bf16.mxu1 %v624_v0 }
 0x10d   :  { %560 = vmatpush3.bf16.msra.mxu1 %v595_v50 }
 0x10e   :  { %561 = vmatprep.subr.bf16.mxu1 %v624_v0 }
 0x111   :  { %562 = vmatpush3.bf16.msra.mxu1 %v596_v51 }
 0x1c7   :  { %v206_v42 = vpop.f32.mrb[0].mxu1 }
 0x1c8   :  { %v207_v43 = vadd.f32 %v206_v42, %v123_v41  ;;  %v525_v44 = vpop.f32.mrb[1].mxu1 }
 0x1c9   :  { %v209_v45 = vpop.f32.mrb[2].mxu1 }
 0x1ca   :  { %v212_v46 = vmul.f32 0.2, %v207_v43  ;;  %v526_v47 = vpop.f32.mrb[3].mxu1 }
 0x1cc   :  { %v213_v48 = vmax.f32 %v207_v43, %v212_v46 }
 0x1ce   :  { %v214_v49 = vpack.c.bf16 %v213_v48, %v213_v48 }
 0x1d0   :  { %544 = vmatmul.mubr.bf16.vlgmr.msra.gmra.mrb[4].mxu0 %v214_v49 }
 0x2a3   :  { %v318_v54 = vpop.f32.mrb[4].mxu0 }
 0x2a4   :  { %v319_v55 = vadd.f32 %v318_v54, %v235_v53  ;;  %v545_v56 = vpop.f32.mrb[5].mxu0 }
 0x2a5   :  { %v321_v57 = vpop.f32.mrb[6].mxu0 }
 0x2a6   :  { %v324_v58 = vmul.f32 0.2, %v319_v55  ;;  %v546_v59 = vpop.f32.mrb[7].mxu0 }
 0x2a8   :  { %v325_v60 = vmax.f32 %v319_v55, %v324_v58 }
 0x2aa   :  { %v326_v61 = vpack.c.bf16 %v325_v60, %v325_v60 }
 0x2ac   :  { %564 = vmatmul.mubr.bf16.vlgmr.msra.gmra.mrb[4].mxu1 %v326_v61 }
 0x37f   :  { %v432_v63 = vpop.f32.mrb[4].mxu1 }
 0x380   :  { %v433_v0 = vadd.f32 %v463_v62, %v432_v63  ;;  %v565_v1 = vpop.f32.mrb[5].mxu1 }
 0x381   :  { %v435_v2 = vpop.f32.mrb[6].mxu1 }
 0x382   :  { %439 = vst.msk [vmem:[%s760_s7] sm:$0xff] %vm438_vm2, %v433_v0  ;;  %v566_v3 = vpop.f32.mrb[7].mxu1 }
 0x383   :  { %444 = vsyncpa [#allocation3], 1 }

</bundles_post_ra>
